<compile_context>
chip_gen: v5e
topology: v5e:2x2
jax: 0.10.0
libtpu: 0.0.40
codegen_flags: <defaults>
</compile_context>

<pallas_src>
import jax
import jax.numpy as jnp
import numpy as np
from jax.experimental import pallas as pl
from jax.experimental.pallas import tpu as pltpu


def _identity_kernel(x_ref, o_ref):
    # Straight tile copy: one vector load + one vector store per vreg.
    o_ref[...] = x_ref[...]


def _round_up(x, m):
    return ((x + m - 1) // m) * m


def _pick_lane_width(total_elems, last_dim):
    """Pick a lane-dense width: a large multiple of 128 dividing the element
    count; fall back to the original last dim (block == full dim is legal)."""
    for L in (4096, 2048, 1024, 512, 256, 128):
        if total_elems % L == 0:
            return L
    return last_dim


def _vmem_capacity_bytes():
    try:
        return int(pltpu.get_tpu_info().vmem_capacity_bytes)
    except Exception:
        # Conservative default (v7x per-TC VMEM).
        return 64 * 1024 * 1024


def _identity_copy_pallas(hidden_states):
    """Explicit Pallas HBM->VMEM->HBM copy of hidden_states (bit-exact)."""
    orig_shape = hidden_states.shape
    dtype = hidden_states.dtype
    itemsize = jnp.dtype(dtype).itemsize
    total = int(np.prod(orig_shape)) if orig_shape else 1
    H = orig_shape[-1] if orig_shape else 1

    # Lane-dense 2-D slab: last dim maps onto the 128-lane axis.
    L = _pick_lane_width(total, H)
    if total % L != 0:
        # Extremely irregular shape: keep the original last dim.
        L = H
    x2d = hidden_states.reshape(-1, L)
    R = x2d.shape[0]

    # Dtype-specific packed-sublane multiple: f32 -> 8, bf16 -> 16, i8/fp8 -> 32.
    sub = max(8, 32 // max(1, itemsize))

    # Per-generation block budget: ~vmem/8 per block (so in+out double-buffered
    # = 4x block stays at ~vmem/2), capped at 16 MiB.
    vmem_cap = _vmem_capacity_bytes()
    target_block_bytes = min(16 * 1024 * 1024, max(1 * 1024 * 1024, vmem_cap // 8))

    bytes_per_row = L * itemsize
    tile_r = max(1, min(R, target_block_bytes // max(1, bytes_per_row)))

    # Keep the grid populated so v7x's two TensorCores both get work:
    # aim for >=4 steps when possible, else >=2, never padding tiny inputs.
    if R >= 4 * sub:
        min_steps = 4
    elif R >= 2 * sub:
        min_steps = 2
    else:
        min_steps = 1
    tile_r = min(tile_r, _round_up(pl.cdiv(R, min_steps), sub))

    if tile_r < R:
        # Partial tiling: second-to-last block dim must be a multiple of `sub`.
        tile_r = max(sub, (tile_r // sub) * sub)
        tile_r = min(tile_r, R)
    # (If tile_r == R the block spans the full dim, which is always legal.)

    grid = (pl.cdiv(R, tile_r),)

    block_bytes = tile_r * bytes_per_row
    # Explicit scoped-VMEM limit: enough for 4x block (in+out, double-buffered)
    # plus headroom, never above the chip's physical VMEM.
    vmem_limit = int(min(vmem_cap, max(32 * 1024 * 1024,
                                       4 * block_bytes + (8 * 1024 * 1024))))

    out2d = pl.pallas_call(
        _identity_kernel,
        out_shape=jax.ShapeDtypeStruct((R, L), dtype),
        grid_spec=pltpu.PrefetchScalarGridSpec(
            num_scalar_prefetch=0,
            grid=grid,
            in_specs=[pl.BlockSpec((tile_r, L), lambda i: (i, 0))],
            out_specs=pl.BlockSpec((tile_r, L), lambda i: (i, 0)),
        ),
        compiler_params=pltpu.CompilerParams(
            dimension_semantics=("parallel",),
            vmem_limit_bytes=vmem_limit,
        ),
    )(x2d)

    return out2d.reshape(orig_shape)


def identity_forward(hidden_states, attention_mask=None, *, force_pallas_copy=False):
    """Pallas port of Identity.forward (layout [B S H]).

    Default path is the perf-optimal one: return the input unchanged — no
    kernel launch, no HBM traffic.  Set force_pallas_copy=True to get a fresh
    buffer produced by the Pallas copy kernel (e.g. for buffer-semantics tests).
    attention_mask is ignored by the module, so it is never touched or DMA'd.
    """
    del attention_mask
    if not force_pallas_copy:
        return hidden_states
    return _identity_copy_pallas(hidden_states)


if __name__ == "__main__":
    # Shapes implied by the module's [B S H] layout: batch=2, seq=8, hidden=32.
    B, S, H = 2, 8, 32

    key = jax.random.PRNGKey(0)
    kx, km = jax.random.split(key)
    hidden_states = jax.random.normal(kx, (B, S, H), dtype=jnp.float32)
    # Mask is accepted by the forward signature but ignored by the module.
    attention_mask = jax.random.bernoulli(km, p=0.25, shape=(B, 1, 1, S))

    # Fast path (what real callers should use): pure pass-through, no kernel.
    fast = identity_forward(hidden_states, attention_mask=attention_mask)
    assert fast is hidden_states

    # Exercise the Pallas copy kernel once.
    out = identity_forward(hidden_states, attention_mask=attention_mask,
                           force_pallas_copy=True)
    out = jax.block_until_ready(out)

    # Identity semantics: output must equal the input exactly.
    np.testing.assert_array_equal(np.asarray(out), np.asarray(hidden_states))
    assert out.dtype == hidden_states.dtype
    assert out.shape == hidden_states.shape

    print("KERNEL_OK")
</pallas_src>

<mosaic_0001>
module attributes {stable_mosaic.version = 11 : i64} {
  func.func @_identity_kernel(%arg0: i32, %arg1: memref<1x512xf32, #tpu.memory_space<vmem>>, %arg2: memref<1x512xf32, #tpu.memory_space<vmem>>) attributes {dimension_semantics = [#tpu.dimension_semantics<parallel>], iteration_bounds = array<i64: 1>, scalar_prefetch = 0 : i64, scratch_operands = 0 : i64, tpu.core_type = #tpu.core_type<tc>, window_params = [{transform_indices = @transform_0, window_bounds = array<i64: 1, 512>}, {transform_indices = @transform_1, window_bounds = array<i64: 1, 512>}]} {
    %c0 = arith.constant 0 : index
    %c0_0 = arith.constant 0 : index
    %0 = vector.load %arg1[%c0, %c0_0] : memref<1x512xf32, #tpu.memory_space<vmem>>, vector<1x512xf32>
    %c0_1 = arith.constant 0 : index
    %c0_2 = arith.constant 0 : index
    %1 = vector.load %arg2[%c0_1, %c0_2] : memref<1x512xf32, #tpu.memory_space<vmem>>, vector<1x512xf32>
    tpu.vector_store %arg2[%c0_1, %c0_2], %0 {strides = array<i32>} : memref<1x512xf32, #tpu.memory_space<vmem>>, vector<1x512xf32>,
    return
  }
  func.func @transform_0(%arg0: i32) -> (i32, i32) {
    %c0_i32 = arith.constant 0 : i32
    %c0_i32_0 = arith.constant 0 : i32
    return %arg0, %c0_i32 : i32, i32
  }
  func.func @transform_1(%arg0: i32) -> (i32, i32) {
    %c0_i32 = arith.constant 0 : i32
    %c0_i32_0 = arith.constant 0 : i32
    return %arg0, %c0_i32 : i32, i32
  }
}

</mosaic_0001>

<bundles_post_ra>
// kernel: tpu_custom_call.1
= control target key start
LH: loop header
LB: loop body
LE: loop exit
PB: predicated region body
PF: predicated region fallthrough
CT: control target
= control target key end

     0   :  { %6 = vsyncpa [#allocation3], 0  ;;  %s118_s0 = inlined_call_operand.hbm [shape: f32[1,512], index: 0, kind: input, shape index: {}]   ;;  %s119_s1 = inlined_call_operand.hbm [shape: f32[1,512], index: 1, kind: output, shape index: {}]  }
   0x1   :  { %7 = vsyncpa [#allocation4], 0  ;;  %s13_s8 = sshll.u32 %s118_s0, 4  ;;  %s100_s9 = smov [#allocation2]   ;;  %s14_s8 = int_to_ptr.hbm [resolvable:$true] %s13_s8 }
   0x2   :  { %s15_s10 = sshll.u32 %s100_s9, 4  ;;  %s16_s10 = int_to_ptr.vmem [resolvable:$true] %s15_s10 }
   0x3   :  { %18 = dma.hbm_to_vmem [thread:$0]  %s14_s8, 64, %s16_s10, [#allocation3]  }
   0x4   :  { %96 = dma.done.wait [#allocation3], 64  }
   0x5   :  { %97 = vsyncadd [#allocation3], 4294967232  ;;  %v24_v0 = vlaneseq  ;;  %s101_s11 = smov [#allocation5]   ;;  %s36_s15 = sshll.u32 %s119_s1, 4  ;;  %v23_v1 = vld [vmem:[#allocation2] sm:$0xf]  ;;  %s37_s15 = int_to_ptr.hbm [resolvable:$true] %s36_s15 }
   0x6   :  { %s34_s12 = sshll.u32 %s101_s11, 4  ;;  %s35_s12 = int_to_ptr.vmem [resolvable:$true] %s34_s12 }
   0x7   :  { %vm26_vm0 = vcmp.lt.s32.totalorder %v24_v0, 512 }
   0x8   :  { %28 = vst.msk [vmem:[#allocation5] sm:$0xf] %vm26_vm0, %v23_v1 }
   0x9   :  { %39 = dma.vmem_to_hbm [thread:$0]  %s35_s12, 64, %s37_s15, [#allocation4]  }
   0xa   :  { %98 = dma.done.wait [#allocation4], 64  }
   0xb   :  { %99 = vsyncadd [#allocation4], 4294967232 }
   0xc   :  { %44 = vsyncpa [#allocation3], 1 }
   0xd   :  { %45 = vsyncpa [#allocation4], 1 }

</bundles_post_ra>
